<compile_context>
chip_gen: v7x
topology: tpu7x:2x2x1
jax: 0.10.0
libtpu: 0.0.40
codegen_flags: <defaults>
</compile_context>

<pallas_src>
import jax
import jax.numpy as jnp
from jax.experimental import pallas as pl
from jax.experimental.pallas import tpu as pltpu


# ------------------------------- FFN kernel ----------------------------------
def _ffn_kernel(x_ref, w1_ref, w2_ref, o_ref, acc_ref):
    # x_ref : (tm, D)       current row tile (constant across the d_ff axis)
    # w1_ref: (D, tff)      column slice of W1
    # w2_ref: (tff, D)      row slice of W2
    # o_ref : (tm, D)       output row tile (resident across the d_ff axis)
    # acc_ref: (tm, D) f32  VMEM accumulator
    j = pl.program_id(1)

    @pl.when(j == 0)
    def _():
        acc_ref[...] = jnp.zeros_like(acc_ref)

    # First matmul: native-dtype operands into the MXU, f32 accumulation.
    h = jnp.dot(x_ref[...], w1_ref[...], preferred_element_type=jnp.float32)
    # Fused ReLU + downcast back to the MXU operand dtype for the second matmul.
    h = jnp.maximum(h, 0.0).astype(w2_ref.dtype)
    # Second matmul: partial contraction over this d_ff chunk, accumulated in f32.
    acc_ref[...] += jnp.dot(h, w2_ref[...], preferred_element_type=jnp.float32)

    @pl.when(j == pl.num_programs(1) - 1)
    def _():
        o_ref[...] = acc_ref[...].astype(o_ref.dtype)


# --------------------------- tile / budget helpers ----------------------------
def _pick_tile(total, preferred, align):
    """Largest multiple of `align` that divides `total` and is <= preferred.
    Falls back to the full extent (always a legal BlockSpec dim)."""
    if total <= preferred:
        return total
    if total % align != 0:
        return total
    t = max(align, (preferred // align) * align)
    while total % t != 0:
        t -= align
    return t


def _vmem_budget_bytes():
    """~75% of the device's VMEM; conservative 64 MiB (v7x per-TC) fallback."""
    cap = 64 * 1024 * 1024
    try:
        info = pltpu.get_tpu_info()
        cap = int(getattr(info, "vmem_capacity_bytes", cap))
    except Exception:
        pass
    return (cap * 3) // 4


def _select_tiles(m, d_model, d_ff, itemsize, row_tile, dff_tile, budget):
    ROW_ALIGN, FF_ALIGN = 8, 128

    def footprint(tm, tff, resident):
        # x + out tiles, double-buffered
        io = 2 * 2 * tm * d_model * itemsize
        # W1 slice + W2 slice (double-buffered only when streamed along d_ff)
        wbuf = 1 if resident else 2
        w = wbuf * 2 * d_model * tff * itemsize
        acc = tm * d_model * 4                 # f32 accumulator scratch
        h = tm * tff * (4 + itemsize)          # f32 h + its downcast copy
        return io + w + acc + h

    # Prefer big row tiles (weight-traffic amortization ~ tm FLOP/byte), but keep
    # at least 2 row tiles so v7x's 2 TensorCores both get work on the parallel axis.
    tm_pref = row_tile
    if m >= 2 * ROW_ALIGN:
        tm_pref = min(tm_pref, max(ROW_ALIGN, m // 2))
    tm = _pick_tile(m, tm_pref, ROW_ALIGN)

    # Resident-weights fast path: d_ff axis collapses to a single step.
    if footprint(tm, d_ff, resident=True) <= budget:
        return tm, d_ff

    # Streamed-weights path: keep tff moderate (512-1024) and shrink until it fits.
    tff = _pick_tile(d_ff, dff_tile, FF_ALIGN)
    prev = None
    while footprint(tm, tff, False) > budget and (tm, tff) != prev:
        prev = (tm, tff)
        if tff > FF_ALIGN:
            tff = _pick_tile(d_ff, max(FF_ALIGN, tff // 2), FF_ALIGN)
        elif tm > ROW_ALIGN:
            tm = _pick_tile(m, max(ROW_ALIGN, tm // 2), ROW_ALIGN)
    return tm, tff


# ---------------------------------- wrapper -----------------------------------
def ffn(x, w1, w2, *, compute_dtype=jnp.bfloat16, row_tile=512, dff_tile=512):
    """y = relu(x @ w1) @ w2, dropout = identity (eval mode).

    x : (..., d_model);  w1 : (d_model, d_ff);  w2 : (d_ff, d_model)
    Weights are (in, out), i.e. PyTorch nn.Linear weight transposed.
    MXU operands are cast to `compute_dtype` (bf16 by default); accumulation is f32.
    """
    orig_shape = x.shape
    d_model = orig_shape[-1]
    d_ff = w1.shape[1]
    assert w1.shape == (d_model, d_ff) and w2.shape == (d_ff, d_model)

    out_dtype = x.dtype
    x2 = x.reshape(-1, d_model).astype(compute_dtype)   # lane-dense: features on lanes
    w1c = w1.astype(compute_dtype)
    w2c = w2.astype(compute_dtype)
    m = x2.shape[0]

    itemsize = jnp.dtype(compute_dtype).itemsize
    budget = _vmem_budget_bytes()
    tm, tff = _select_tiles(m, d_model, d_ff, itemsize, row_tile, dff_tile, budget)

    n_row, n_ff = m // tm, d_ff // tff
    grid = (n_row, n_ff)

    # Advisory cost estimate for XLA's scheduler.
    w_bytes = 2 * d_model * d_ff * itemsize
    bytes_accessed = (m * d_model * itemsize
                      + m * d_model * jnp.dtype(out_dtype).itemsize
                      + w_bytes * (n_row if n_ff > 1 else 1))
    cost = pl.CostEstimate(flops=4 * m * d_model * d_ff,
                           transcendentals=0,
                           bytes_accessed=int(bytes_accessed))

    out = pl.pallas_call(
        _ffn_kernel,
        out_shape=jax.ShapeDtypeStruct((m, d_model), out_dtype),
        grid_spec=pltpu.PrefetchScalarGridSpec(
            num_scalar_prefetch=0,
            grid=grid,
            in_specs=[
                # x row tile: constant across the d_ff axis -> fetched once per row tile.
                pl.BlockSpec((tm, d_model), lambda i, j: (i, 0)),
                # W1 column slice / W2 row slice: streamed along the d_ff axis
                # (constant block index when resident -> DMA'd only once).
                pl.BlockSpec((d_model, tff), lambda i, j: (0, j)),
                pl.BlockSpec((tff, d_model), lambda i, j: (j, 0)),
            ],
            # Output tile resident across the d_ff (reduction) axis -> accumulator.
            out_specs=pl.BlockSpec((tm, d_model), lambda i, j: (i, 0)),
            scratch_shapes=[pltpu.VMEM((tm, d_model), jnp.float32)],
        ),
        compiler_params=pltpu.CompilerParams(
            dimension_semantics=("parallel", "arbitrary"),
            vmem_limit_bytes=budget,
        ),
        cost_estimate=cost,
    )(x2, w1c, w2c)
    # TODO(synk): an fp8 weight path (v7x MXU) could halve weight traffic again.
    return out.reshape(orig_shape)


# --------------------------- pure-JAX references ------------------------------
def _ref_ffn_f32(x, w1, w2):
    return jnp.maximum(x @ w1, 0.0) @ w2


def _ref_ffn_cast(x, w1, w2, compute_dtype):
    """Reference matching the kernel's dtype pipeline (casted operands, f32 accum)."""
    xc, w1c, w2c = (a.astype(compute_dtype) for a in (x, w1, w2))
    h = jnp.maximum(jnp.dot(xc, w1c, preferred_element_type=jnp.float32), 0.0)
    h = h.astype(compute_dtype)
    return jnp.dot(h, w2c, preferred_element_type=jnp.float32).astype(x.dtype)


# ---------------------------------- main --------------------------------------
if __name__ == "__main__":
    # Small but lane-dense shapes: feature dims are multiples of 128 so output
    # stores are unmasked full-lane vst's and MXU tiles are well shaped.
    B, L, d_model, d_ff = 2, 8, 128, 512

    key = jax.random.PRNGKey(0)
    kx, k1, k2 = jax.random.split(key, 3)

    def linear_w(k, fan_in, fan_out):
        bound = 1.0 / (fan_in ** 0.5)
        return jax.random.uniform(k, (fan_in, fan_out), jnp.float32, -bound, bound)

    x = jax.random.normal(kx, (B, L, d_model), jnp.float32)
    w1 = linear_w(k1, d_model, d_ff)
    w2 = linear_w(k2, d_ff, d_model)

    # TODO(synk): nn.Dropout is identity here (eval mode); training-mode dropout
    # would use pltpu.prng_seed / pltpu.prng_random_bits inside the kernel.

    # bf16-operand path (default, MXU-friendly).
    out_bf16 = jax.block_until_ready(ffn(x, w1, w2))
    assert out_bf16.shape == (B, L, d_model)
    ref_cast = _ref_ffn_cast(x, w1, w2, jnp.bfloat16)
    ref_f32 = _ref_ffn_f32(x, w1, w2)
    assert jnp.allclose(out_bf16, ref_cast, atol=2e-3, rtol=2e-3), \
        "bf16 path mismatch vs dtype-matched reference"
    assert jnp.allclose(out_bf16, ref_f32, atol=3e-2, rtol=3e-2), \
        "bf16 path mismatch vs f32 reference"

    # f32-operand path (exercises the same kernel at full precision).
    out_f32 = jax.block_until_ready(ffn(x, w1, w2, compute_dtype=jnp.float32))
    assert jnp.allclose(out_f32, ref_f32, atol=1e-4, rtol=1e-4), \
        "f32 path mismatch vs f32 reference"

    print("KERNEL_OK")
</pallas_src>

<mosaic_0001>
module attributes {stable_mosaic.version = 11 : i64} {
  func.func @_ffn_kernel(%arg0: i32, %arg1: i32, %arg2: memref<8x128xbf16, #tpu.memory_space<vmem>>, %arg3: memref<128x512xbf16, #tpu.memory_space<vmem>>, %arg4: memref<512x128xbf16, #tpu.memory_space<vmem>>, %arg5: memref<8x128xf32, #tpu.memory_space<vmem>>, %arg6: memref<8x128xf32, #tpu.memory_space<vmem>>) attributes {dimension_semantics = [#tpu.dimension_semantics<parallel>, #tpu.dimension_semantics<arbitrary>], iteration_bounds = array<i64: 2, 1>, scalar_prefetch = 0 : i64, scratch_operands = 1 : i64, tpu.core_type = #tpu.core_type<tc>, window_params = [{transform_indices = @transform_0, window_bounds = array<i64: 8, 128>}, {transform_indices = @transform_1, window_bounds = array<i64: 128, 512>}, {transform_indices = @transform_2, window_bounds = array<i64: 512, 128>}, {transform_indices = @transform_3, window_bounds = array<i64: 8, 128>}]} {
    %c0_i32 = arith.constant 0 : i32
    %0 = arith.cmpi eq, %arg1, %c0_i32 : i32
    %1 = arith.extui %0 : i1 to i32
    %c0_i32_0 = arith.constant 0 : i32
    %2 = arith.cmpi ne, %1, %c0_i32_0 : i32
    scf.if %2 {
      %cst_14 = arith.constant 0.000000e+00 : f32
      %17 = vector.broadcast %cst_14 : f32 to vector<8x128xf32>
      %c0_15 = arith.constant 0 : index
      %c0_16 = arith.constant 0 : index
      %18 = vector.load %arg6[%c0_15, %c0_16] : memref<8x128xf32, #tpu.memory_space<vmem>>, vector<8x128xf32>
      tpu.vector_store %arg6[%c0_15, %c0_16], %17 {strides = array<i32>} : memref<8x128xf32, #tpu.memory_space<vmem>>, vector<8x128xf32>,
    } else {
    }
    %c0 = arith.constant 0 : index
    %c0_1 = arith.constant 0 : index
    %3 = vector.load %arg2[%c0, %c0_1] : memref<8x128xbf16, #tpu.memory_space<vmem>>, vector<8x128xbf16>
    %c0_2 = arith.constant 0 : index
    %c0_3 = arith.constant 0 : index
    %4 = vector.load %arg3[%c0_2, %c0_3] : memref<128x512xbf16, #tpu.memory_space<vmem>>, vector<128x512xbf16>
    %cst = arith.constant dense<0.000000e+00> : vector<8x512xf32>
    %5 = tpu.matmul %3, %4, %cst {dimension_numbers = #tpu.dot_dimension_numbers<[1], [0], [0], [1], [0, 0, 1, 1], [], []>} : vector<8x128xbf16>, vector<128x512xbf16>, vector<8x512xf32> -> vector<8x512xf32>
    %cst_4 = arith.constant 0.000000e+00 : f32
    %6 = vector.broadcast %cst_4 : f32 to vector<8x512xf32>
    %7 = arith.maximumf %5, %6 : vector<8x512xf32>
    %8 = arith.truncf %7 : vector<8x512xf32> to vector<8x512xbf16>
    %c0_5 = arith.constant 0 : index
    %c0_6 = arith.constant 0 : index
    %9 = vector.load %arg6[%c0_5, %c0_6] : memref<8x128xf32, #tpu.memory_space<vmem>>, vector<8x128xf32>
    %c0_7 = arith.constant 0 : index
    %c0_8 = arith.constant 0 : index
    %10 = vector.load %arg4[%c0_7, %c0_8] : memref<512x128xbf16, #tpu.memory_space<vmem>>, vector<512x128xbf16>
    %cst_9 = arith.constant dense<0.000000e+00> : vector<8x128xf32>
    %11 = tpu.matmul %8, %10, %cst_9 {dimension_numbers = #tpu.dot_dimension_numbers<[1], [0], [0], [1], [0, 0, 1, 1], [], []>} : vector<8x512xbf16>, vector<512x128xbf16>, vector<8x128xf32> -> vector<8x128xf32>
    %12 = arith.addf %9, %11 : vector<8x128xf32>
    %c0_10 = arith.constant 0 : index
    %c0_11 = arith.constant 0 : index
    %13 = vector.load %arg6[%c0_10, %c0_11] : memref<8x128xf32, #tpu.memory_space<vmem>>, vector<8x128xf32>
    tpu.vector_store %arg6[%c0_10, %c0_11], %12 {strides = array<i32>} : memref<8x128xf32, #tpu.memory_space<vmem>>, vector<8x128xf32>,
    %c0_i32_12 = arith.constant 0 : i32
    %14 = arith.cmpi eq, %arg1, %c0_i32_12 : i32
    %15 = arith.extui %14 : i1 to i32
    %c0_i32_13 = arith.constant 0 : i32
    %16 = arith.cmpi ne, %15, %c0_i32_13 : i32
    scf.if %16 {
      %c0_14 = arith.constant 0 : index
      %c0_15 = arith.constant 0 : index
      %17 = vector.load %arg6[%c0_14, %c0_15] : memref<8x128xf32, #tpu.memory_space<vmem>>, vector<8x128xf32>
      %c0_16 = arith.constant 0 : index
      %c0_17 = arith.constant 0 : index
      %18 = vector.load %arg5[%c0_16, %c0_17] : memref<8x128xf32, #tpu.memory_space<vmem>>, vector<8x128xf32>
      tpu.vector_store %arg5[%c0_16, %c0_17], %17 {strides = array<i32>} : memref<8x128xf32, #tpu.memory_space<vmem>>, vector<8x128xf32>,
    } else {
    }
    return
  }
  func.func @transform_0(%arg0: i32, %arg1: i32) -> (i32, i32) {
    %c0_i32 = arith.constant 0 : i32
    %c0_i32_0 = arith.constant 0 : i32
    return %arg0, %c0_i32 : i32, i32
  }
  func.func @transform_1(%arg0: i32, %arg1: i32) -> (i32, i32) {
    %c0_i32 = arith.constant 0 : i32
    %c0_i32_0 = arith.constant 0 : i32
    return %c0_i32, %arg1 : i32, i32
  }
  func.func @transform_2(%arg0: i32, %arg1: i32) -> (i32, i32) {
    %c0_i32 = arith.constant 0 : i32
    %c0_i32_0 = arith.constant 0 : i32
    return %arg1, %c0_i32 : i32, i32
  }
  func.func @transform_3(%arg0: i32, %arg1: i32) -> (i32, i32) {
    %c0_i32 = arith.constant 0 : i32
    %c0_i32_0 = arith.constant 0 : i32
    return %arg0, %c0_i32 : i32, i32
  }
}

</mosaic_0001>

<bundles_post_ra>
// kernel: tpu_custom_call.1
= control target key start
LH: loop header
LB: loop body
LE: loop exit
PB: predicated region body
PF: predicated region fallthrough
CT: control target
= control target key end

     0   :  { %8 = vsyncpa [#allocation4], 0  ;;  %s1743_s0 = inlined_call_operand.hbm [shape: bf16[16,128], index: 0, kind: input, shape index: {}]   ;;  %s1744_s1 = inlined_call_operand.hbm [shape: bf16[128,512], index: 1, kind: input, shape index: {}]   ;;  %s1745_s2 = inlined_call_operand.hbm [shape: bf16[512,128], index: 2, kind: input, shape index: {}]   ;;  %s1746_s3 = inlined_call_operand.hbm [shape: f32[16,128], index: 3, kind: output, shape index: {}]  }
   0x1   :  { %10 = vsyncpa [#allocation4 + $0x1], 0 }
   0x2   :  { %11 = vsyncpa [#allocation7], 0 }
   0x3   :  { %12 = vsyncpa [#allocation5], 0 }
   0x4   :  { %14 = vsyncpa [#allocation5 + $0x1], 0  ;;  %s1489_s12 = smov 0   ;;  %s1491_s13 = smov 0  }
   0x5   :  { %s1493_s14 = smov 0   ;;  %s1495_s15 = smov 0  }
   0x6   :  { %s1497_s16 = smov 0   ;;  %s1499_s17 = smov 0  }
   0x7 LB: > { %s993_s18 = sadd.s32 4294967295, %s1458_s17   ;;  %s994_s19 = sadd.s32 4294967294, %s1458_s17   ;;  %s1458_s17 = sphi %s1499_s17, %s20_s17   ;;  %s1454_s16 = sphi %s1497_s16, %s1768_s16   ;;  %s1450_s15 = sphi %s1495_s15, %s1767_s15   ;;  %s1446_s14 = sphi %s1493_s14, %s1766_s14   ;;  %s1442_s13 = sphi %s1491_s13, %s1765_s13   ;;  %s1438_s12 = sphi %s1489_s12, %s1764_s12  }
   0x8   : > { %p52_p0 = scmp.ne.s32.totalorder %s1442_s13, %s1438_s12  ;;  %p1523_p1 = scmp.eq.s32.totalorder %s993_s18, 0 }
   0x9   : > { %p1527_p2 = scmp.eq.s32.totalorder %s993_s18, 1  ;;  %p134_p3 = scmp.eq.s32.totalorder %s994_s19, 1 }
   0xa   : > { %s1751_s20 = scalar_select %p1523_p1, 1, 0 }
   0xb   : > { %p1533_p4 = por %p1523_p1, %p52_p0  ;;  %p995_p5 = scmp.ge.s32.totalorder %s1458_s17, 1 }
   0xc   : > { %p1538_p6 = por %p134_p3, %p52_p0  ;;  %p141_p7 = scmp.lt.s32.totalorder %s1458_s17, 3 }
   0xd   : > { %s1753_s22 = scalar_select %p1533_p4, 1, 0 }
   0xe   : > { %s1754_s23 = scalar_select %p1538_p6, 1, 0 }
   0xf   : > { %p1543_p8 = pnand %p995_p5, %p141_p7  ;;  %s1460_s25 = smov [#allocation6]  }
  0x10   : > { %s156_s26 = sshll.u32 %s1460_s25, 4  ;;  %s1461_s28 = smov [#allocation8]   ;;  %s1547_s26 = int_to_ptr.vmem [resolvable:$true] %s156_s26 }
  0x11   : > { %p1130_p9 = pneg %p1543_p8  ;;  %s172_s29 = sshll.u32 %s1461_s28, 4  ;;  %s1558_s29 = int_to_ptr.vmem [resolvable:$true] %s172_s29 }
  0x12   : > { %s1286_s5 = scalar_lea.hbm %s1744_s1, 4096 }
  0x13   : > { %p1554_p11 = pnand %p1130_p9, %p1523_p1  ;;  %p1287_p12 = scmp.ne.s32.totalorder %s1744_s1, %s1286_s5 }
  0x14   : > { %p1293_p5 = scmp.lt.u32.totalorder %s1286_s5, %s1744_s1 }
  0x15   : > { %p1288_p13 = pneg %p1554_p11 }
  0x17   : > { %p1289_p0 = pnand %p1288_p13, %p1287_p12 }
  0x19   : > { %p1290_p3 = pneg %p1289_p0 }
  0x1b   : > { %p1295_p7 = pnand %p1293_p5, %p1290_p3 }
  0x1d   : > { %1298 = shalt.err (!%p1295_p7)
}
  0x1e   : > { %s1299_s10 = scalar_lea.vmem %s1547_s26, 4096  ;;  %p1307_p1 = scmp.lt.s32.totalorder %s1547_s26, %s1547_s26 }
  0x1f   : > { %p1300_p9 = scmp.ne.s32.totalorder %s1547_s26, %s1299_s10  ;;  %p1308_p12 = scmp.lt.s32.totalorder %s1299_s10, %s1299_s10 }
  0x21   : > { %p1302_p10 = pnand %p1300_p9, %p1288_p13  ;;  %p1309_p0 = por %p1308_p12, %p1307_p1 }
  0x23   : > { %p1303_p6 = pneg %p1302_p10 }
  0x25   : > { %p1310_p4 = pnand %p1309_p0, %p1303_p6 }
  0x27   : > { %1313 = shalt.err (!%p1310_p4)
}
  0x28   : > { %s1462_s11 = smov 256   ;;  %s1463_s18 = smov 16  }
  0x29   : > { %1133 = dma.hbm_to_vmem [thread:$0]  (!%p1554_p11), %s1744_s1, 4096, %s1547_s26, [#allocation7], %s1462_s11, %s1462_s11, %s1463_s18  }
  0x2a   : > { %s1314_s4 = scalar_lea.hbm %s1745_s2, 4096 }
  0x2b   : > { %p1315_p1 = scmp.ne.s32.totalorder %s1745_s2, %s1314_s4  ;;  %p1321_p10 = scmp.lt.u32.totalorder %s1314_s4, %s1745_s2 }
  0x2d   : > { %p1317_p4 = pnand %p1315_p1, %p1288_p13 }
  0x2f   : > { %p1318_p6 = pneg %p1317_p4 }
  0x31   : > { %p1323_p3 = pnand %p1321_p10, %p1318_p6 }
  0x33   : > { %1326 = shalt.err (!%p1323_p3)
}
  0x34   : > { %s1327_s26 = scalar_lea.vmem %s1558_s29, 4096  ;;  %p1335_p12 = scmp.lt.s32.totalorder %s1558_s29, %s1558_s29 }
  0x35   : > { %p1328_p5 = scmp.ne.s32.totalorder %s1558_s29, %s1327_s26  ;;  %p1336_p0 = scmp.lt.s32.totalorder %s1327_s26, %s1327_s26 }
  0x37   : > { %p1330_p7 = pnand %p1328_p5, %p1288_p13  ;;  %p1337_p1 = por %p1336_p0, %p1335_p12 }
  0x39   : > { %p1331_p9 = pneg %p1330_p7 }
  0x3b   : > { %p1338_p4 = pnand %p1337_p1, %p1331_p9 }
  0x3d   : > { %1341 = shalt.err (!%p1338_p4)
}
  0x3e   : > { %s1464_s9 = smov 64   ;;  %s1465_s10 = smov 4  }
  0x3f   : > { %1136 = dma.hbm_to_vmem [thread:$0]  (!%p1554_p11), %s1745_s2, 4096, %s1558_s29, [#allocation7], %s1464_s9, %s1464_s9, %s1465_s10  }
  0x40   : > { %s32_s19 = sadd.s32 1, %s1454_s16  ;;  %s39_s25 = sadd.s32 1, %s1446_s14 }
  0x41   : > { %p34_p13 = scmp.ge.s32.totalorder %s32_s19, 2  ;;  %p46_p6 = scmp.ne.s32.totalorder %s1446_s14, %s1442_s13 }
  0x42   : > { %p47_p10 = scmp.eq.s32.totalorder %s1458_s17, 0  ;;  %p1147_p3 = scmp.lt.s32.totalorder %s1458_s17, 2 }
  0x43   : > { %s1770_s19 = smov (%p34_p13, %s32_s19), 0  ;;  %p1622_p7 = por %p1527_p2, %p46_p6 }
  0x44   : > { %p48_p5 = por %p47_p10, %p46_p6  ;;  %s36_s27 = ssub.s32 %s1454_s16, %s1770_s19 }
  0x45   : > { %s1757_s28 = scalar_select %p1622_p7, 1, 0 }
  0x46   : > { %s186_s30 = sand.u32 1, %s1446_s14   ;;  %p37_p9 = scmp.eq.s32.totalorder %s36_s27, 0 }
  0x47   : > { %s999_s29 = sshll.u32 %s186_s30, 2  ;;  %s1000_s4 = sshll.u32 %s1454_s16, 6 }
  0x48   : > { %s1631_s5 = scalar_select %p37_p9, %s1446_s14, %s39_s25  }
  0x49   : > { %s1636_s8 = scalar_lea.hbm %s1743_s0, %s1000_s4  ;;  %s190_s21 = scalar_lea.vmem [#allocation3], %s999_s29 }
  0x4a   : > { %s197_s26 = sshll.u32 %s190_s21, 4  ;;  %p1640_p2 = pnand %p1147_p3, %p48_p5  ;;  %s1644_s26 = int_to_ptr.vmem [resolvable:$true] %s197_s26 }
  0x4b   : > { %s187_s10 = scalar_lea.sflag [#allocation4], %s186_s30  ;;  %s1342_s11 = scalar_lea.hbm %s1636_s8, 64 }
  0x4c   : > { %p1343_p11 = scmp.ne.s32.totalorder %s1636_s8, %s1342_s11  ;;  %p1344_p12 = pneg %p1640_p2 }
  0x4d   : > { %s1347_s27 = scalar_lea.hbm %s1743_s0, 128  ;;  %p1348_p4 = scmp.lt.u32.totalorder %s1636_s8, %s1743_s0 }
  0x4e   : > { %p1345_p0 = pnand %p1344_p12, %p1343_p11  ;;  %p1349_p13 = scmp.lt.u32.totalorder %s1347_s27, %s1342_s11 }
  0x4f   : > { %p1351_p10 = scmp.lt.u32.totalorder %s1342_s11, %s1636_s8 }
  0x50   : > { %p1346_p1 = pneg %p1345_p0  ;;  %p1350_p6 = por %p1349_p13, %p1348_p4 }
  0x52   : > { %p1352_p3 = por %p1351_p10, %p1350_p6 }
  0x54   : > { %p1353_p5 = pnand %p1352_p3, %p1346_p1 }
  0x56   : > { %1356 = shalt.err (!%p1353_p5)
}
  0x57   : > { %s1357_s30 = scalar_lea.vmem %s1644_s26, 64  ;;  %s1466_s6 = smov [#allocation3]  }
  0x58   : > { %p1358_p9 = scmp.ne.s32.totalorder %s1644_s26, %s1357_s30  ;;  %s1362_s7 = sshll.u32 %s1466_s6, 4  ;;  %s1363_s7 = int_to_ptr.vmem [resolvable:$false] %s1362_s7 }
  0x59   : > { %s1364_s21 = scalar_lea.vmem %s1363_s7, 128  ;;  %p1365_p7 = scmp.lt.s32.totalorder %s1644_s26, %s1363_s7 }
  0x5a   : > { %p1360_p11 = pnand %p1358_p9, %p1344_p12  ;;  %p1366_p4 = scmp.lt.s32.totalorder %s1364_s21, %s1357_s30 }
  0x5c   : > { %p1361_p0 = pneg %p1360_p11  ;;  %p1367_p13 = por %p1366_p4, %p1365_p7 }
  0x5e   : > { %p1368_p6 = pnand %p1367_p13, %p1361_p0 }
  0x60   : > { %1371 = shalt.err (!%p1368_p6)
}
  0x61   : > { %1140 = dma.hbm_to_vmem [thread:$0]  (!%p1640_p2), %s1636_s8, 64, %s1644_s26, %s187_s10  }
  0x62   : > { %206 = sbr.rel (%p1543_p8) target bundleno = 592 (0x250), region = 32  ;;  %s1674_s11 = sand.u32 (!%p1543_p8), 1, %s1442_s13  }
  0x63   : > { %s1002_s18 = sshll.u32 (!%p1543_p8), %s1674_s11, 2  ;;  %s209_s25 = scalar_lea.sflag (!%p1543_p8), [#allocation4], %s1674_s11 }
  0x64   : > { %s1678_s27 = scalar_lea.vmem (!%p1543_p8), [#allocation3], %s1002_s18  ;;  %p1759_p7 = scmp.ne.s32.totalorder (!%p1543_p8), %s1753_s22, 0 }
  0x69   : > { %1425 = dma.done.wait (%p1759_p7), %s209_s25, 64  }
  0x6a   : > { %1427 = vsyncadd (%p1759_p7), %s209_s25, 4294967232  ;;  %p1760_p2 = scmp.ne.s32.totalorder %s1751_s20, 0 }
  0x6c   : > { %1429 = dma.done.wait (%p1760_p2), [#allocation7], 8192  }
  0x6d   : > { %1431 = vsyncadd (%p1760_p2), [#allocation7], 4294959104  ;;  %v1467_v0 = vmov 0   ;;  %v1206_v1 = vld [vmem:[#allocation6 + $0x4] ss:$16 sps:$4 sm:$0xff]   ;;  %v1258_v38 = vld [vmem:[#allocation8 + $0x48] sm:$0xff]  }
  0x6e   : > { %476 = vmatprep.mubr.bf16.mxu0 %v1467_v0  ;;  %517 = vmatprep.mubr.bf16.mxu1 %v1467_v0  ;;  %v1208_v2 = vld [vmem:[#allocation6 + $0xc] ss:$16 sps:$4 sm:$0xff]   ;;  %v1210_v3 = vld [vmem:[#allocation6] ss:$16 sps:$4 sm:$0xff]   ;;  %v1211_v4 = vld [vmem:[#allocation6 + $0x8] ss:$16 sps:$4 sm:$0xff]  }
  0x6f   : > { %444 = vmatprep.subr.bf16.mxu0 %v1206_v1  ;;  %485 = vmatprep.subr.bf16.mxu1 %v1208_v2  ;;  %v1212_v5 = vld [vmem:[#allocation6 + $0x24] ss:$16 sps:$4 sm:$0xff]   ;;  %v1214_v6 = vld [vmem:[#allocation6 + $0x2c] ss:$16 sps:$4 sm:$0xff]   ;;  %v1216_v7 = vld [vmem:[#allocation6 + $0x20] ss:$16 sps:$4 sm:$0xff]  }
  0x70   : > { %445 = vmatpush1.bf16.msra.mxu0 %v1210_v3  ;;  %486 = vmatpush1.bf16.msra.mxu1 %v1211_v4  ;;  %v1217_v8 = vld [vmem:[#allocation6 + $0x28] ss:$16 sps:$4 sm:$0xff]   ;;  %v1218_v9 = vld [vmem:[#allocation6 + $0x44] ss:$16 sps:$4 sm:$0xff]   ;;  %v1220_v10 = vld [vmem:[#allocation6 + $0x4c] ss:$16 sps:$4 sm:$0xff]  }
  0x71   : > { %446 = vmatprep.subr.bf16.mxu0 %v1212_v5  ;;  %487 = vmatprep.subr.bf16.mxu1 %v1214_v6  ;;  %v1222_v11 = vld [vmem:[#allocation6 + $0x40] ss:$16 sps:$4 sm:$0xff]   ;;  %v1223_v12 = vld [vmem:[#allocation6 + $0x48] ss:$16 sps:$4 sm:$0xff]   ;;  %v1224_v13 = vld [vmem:[#allocation6 + $0x64] ss:$16 sps:$4 sm:$0xff]  }
  0x72   : > { %v1226_v14 = vld [vmem:[#allocation6 + $0x6c] ss:$16 sps:$4 sm:$0xff]   ;;  %v1228_v15 = vld [vmem:[#allocation6 + $0x60] ss:$16 sps:$4 sm:$0xff]   ;;  %v1229_v16 = vld [vmem:[#allocation6 + $0x68] ss:$16 sps:$4 sm:$0xff]  }
  0x73   : > { %v1230_v17 = vld [vmem:[#allocation6 + $0x84] ss:$16 sps:$4 sm:$0xff]   ;;  %v1232_v18 = vld [vmem:[#allocation6 + $0x8c] ss:$16 sps:$4 sm:$0xff]   ;;  %v1234_v19 = vld [vmem:[#allocation6 + $0x80] ss:$16 sps:$4 sm:$0xff]  }
  0x74   : > { %447 = vmatpush1.bf16.msra.mxu0 %v1216_v7  ;;  %488 = vmatpush1.bf16.msra.mxu1 %v1217_v8  ;;  %v1235_v20 = vld [vmem:[#allocation6 + $0x88] ss:$16 sps:$4 sm:$0xff]   ;;  %v1236_v21 = vld [vmem:[#allocation6 + $0xa4] ss:$16 sps:$4 sm:$0xff]   ;;  %v1238_v22 = vld [vmem:[#allocation6 + $0xac] ss:$16 sps:$4 sm:$0xff]  }
  0x75   : > { %448 = vmatprep.subr.bf16.mxu0 %v1218_v9  ;;  %489 = vmatprep.subr.bf16.mxu1 %v1220_v10  ;;  %v1240_v23 = vld [vmem:[#allocation6 + $0xa0] ss:$16 sps:$4 sm:$0xff]   ;;  %v1241_v24 = vld [vmem:[#allocation6 + $0xa8] ss:$16 sps:$4 sm:$0xff]   ;;  %v1242_v25 = vld [vmem:[#allocation6 + $0xc4] ss:$16 sps:$4 sm:$0xff]  }
  0x76   : > { %v1244_v26 = vld [vmem:[#allocation6 + $0xcc] ss:$16 sps:$4 sm:$0xff]   ;;  %v1246_v27 = vld [vmem:[#allocation6 + $0xc0] ss:$16 sps:$4 sm:$0xff]   ;;  %v1247_v28 = vld [vmem:[#allocation6 + $0xc8] ss:$16 sps:$4 sm:$0xff]  }
  0x77   : > { %v1248_v29 = vld [vmem:[#allocation6 + $0xe4] ss:$16 sps:$4 sm:$0xff]   ;;  %v1250_v30 = vld [vmem:[#allocation6 + $0xec] ss:$16 sps:$4 sm:$0xff]   ;;  %v1252_v31 = vld [vmem:[#allocation6 + $0xe0] ss:$16 sps:$4 sm:$0xff]  }
  0x78   : > { %449 = vmatpush1.bf16.msra.mxu0 %v1222_v11  ;;  %490 = vmatpush1.bf16.msra.mxu1 %v1223_v12  ;;  %v1253_v32 = vld [vmem:[#allocation6 + $0xe8] ss:$16 sps:$4 sm:$0xff]   ;;  %v1254_v33 = vld [vmem:[#allocation8 + $0x40] sm:$0xff]   ;;  %v1262_v42 = vld [vmem:[#allocation8 + $0x50] sm:$0xff]   ;;  %s1005_s20 = sshll.u32 %s1674_s11, 3  ;;  %s1071_s22 = sshll.u32 %s1450_s15, 7 }
  0x79   : > { %450 = vmatprep.subr.bf16.mxu0 %v1224_v13  ;;  %491 = vmatprep.subr.bf16.mxu1 %v1226_v14  ;;  %v1255_v34 = vld [vmem:[#allocation8 + $0xc0] sm:$0xff]   ;;  %v251_v35 = vld [vmem:[%s1678_s27] sm:$0xf]  ;;  %v1259_v39 = vld [vmem:[#allocation8 + $0xc8] sm:$0xff]   ;;  %s242_s24 = scalar_lea.vmem [#allocation9], %s1005_s20  ;;  %s1694_s10 = scalar_lea.hbm %s1746_s3, %s1071_s22 }
  0x7a   : > { %v1256_v36 = vld [vmem:[#allocation8] sm:$0xff]   ;;  %v1260_v40 = vld [vmem:[#allocation8 + $0x8] sm:$0xff]   ;;  %v1263_v43 = vld [vmem:[#allocation8 + $0xd0] sm:$0xff]   ;;  %s892_s8 = sshll.u32 %s242_s24, 4  ;;  %s879_s15 = scalar_lea.sflag [#allocation5], %s1674_s11  ;;  %s1696_s8 = int_to_ptr.vmem [resolvable:$true] %s892_s8 }
  0x7b   : > { %v1257_v37 = vld [vmem:[#allocation8 + $0x80] sm:$0xff]   ;;  %v1261_v41 = vld [vmem:[#allocation8 + $0x88] sm:$0xff]   ;;  %v1264_v44 = vld [vmem:[#allocation8 + $0x10] sm:$0xff]   ;;  %s1372_s29 = scalar_lea.vmem %s1696_s8, 128  ;;  %p1761_p12 = scmp.ne.s32.totalorder %s1757_s28, 0 }
  0x7c   : > { %451 = vmatpush1.bf16.msra.mxu0 %v1228_v15  ;;  %492 = vmatpush1.bf16.msra.mxu1 %v1229_v16  ;;  %v1265_v45 = vld [vmem:[#allocation8 + $0x90] sm:$0xff]   ;;  %v1266_v46 = vld [vmem:[#allocation8 + $0x58] sm:$0xff]   ;;  %v1270_v50 = vld [vmem:[#allocation8 + $0x60] sm:$0xff]   ;;  %p1373_p8 = scmp.ne.s32.totalorder %s1696_s8, %s1372_s29  ;;  %s1468_s4 = smov [#allocation9]  }
  0x7d   : > { %452 = vmatprep.subr.bf16.mxu0 %v1230_v17  ;;  %493 = vmatprep.subr.bf16.mxu1 %v1232_v18  ;;  %v1267_v47 = vld [vmem:[#allocation8 + $0xd8] sm:$0xff]   ;;  %v1271_v51 = vld [vmem:[#allocation8 + $0xe0] sm:$0xff]   ;;  %v1274_v54 = vld [vmem:[#allocation8 + $0x68] sm:$0xff]   ;;  %s1376_s30 = sshll.u32 %s1468_s4, 4  ;;  %s1377_s30 = int_to_ptr.vmem [resolvable:$false] %s1376_s30 }
  0x7e   : > { %v1268_v48 = vld [vmem:[#allocation8 + $0x18] sm:$0xff]   ;;  %v1272_v52 = vld [vmem:[#allocation8 + $0x20] sm:$0xff]   ;;  %v1275_v55 = vld [vmem:[#allocation8 + $0xe8] sm:$0xff]   ;;  %p1374_p1 = pnand %p1373_p8, %p1761_p12  ;;  %s1378_s6 = scalar_lea.vmem %s1377_s30, 256 }
  0x7f   : > { %v1269_v49 = vld [vmem:[#allocation8 + $0x98] sm:$0xff]   ;;  %v1273_v53 = vld [vmem:[#allocation8 + $0xa0] sm:$0xff]   ;;  %v1276_v56 = vld [vmem:[#allocation8 + $0x28] sm:$0xff]   ;;  %p1379_p3 = scmp.lt.s32.totalorder %s1696_s8, %s1377_s30  ;;  %p1380_p5 = scmp.lt.s32.totalorder %s1378_s6, %s1372_s29 }
  0x80   : > { %453 = vmatpush1.bf16.msra.mxu0 %v1234_v19  ;;  %494 = vmatpush1.bf16.msra.mxu1 %v1235_v20  ;;  %v1277_v57 = vld [vmem:[#allocation8 + $0xa8] sm:$0xff]   ;;  %v1278_v58 = vld [vmem:[#allocation8 + $0x70] sm:$0xff]   ;;  %v1282_v62 = vld [vmem:[#allocation8 + $0x78] sm:$0xff]   ;;  %p1375_p10 = pneg %p1374_p1 }
  0x81   : > { %454 = vmatprep.subr.bf16.mxu0 %v1236_v21  ;;  %495 = vmatprep.subr.bf16.mxu1 %v1238_v22  ;;  %v1279_v59 = vld [vmem:[#allocation8 + $0xf0] sm:$0xff]   ;;  %v1283_v63 = vld [vmem:[#allocation8 + $0xf8] sm:$0xff]   ;;  %p1381_p9 = por %p1380_p5, %p1379_p3 }
  0x82   : > { %v1280_v60 = vld [vmem:[#allocation8 + $0x30] sm:$0xff]   ;;  %v1284_v0 = vld [vmem:[#allocation8 + $0x38] sm:$0xff]  }
  0x83   : > { %v1281_v61 = vld [vmem:[#allocation8 + $0xb0] sm:$0xff]   ;;  %v1285_v1 = vld [vmem:[#allocation8 + $0xb8] sm:$0xff]   ;;  %p1382_p11 = pnand %p1381_p9, %p1375_p10 }
  0x84   : > { %455 = vmatpush1.bf16.msra.mxu0 %v1240_v23  ;;  %496 = vmatpush1.bf16.msra.mxu1 %v1241_v24 }
  0x85   : > { %456 = vmatprep.subr.bf16.mxu0 %v1242_v25  ;;  %497 = vmatprep.subr.bf16.mxu1 %v1244_v26 }
  0x88   : > { %457 = vmatpush1.bf16.msra.mxu0 %v1246_v27  ;;  %498 = vmatpush1.bf16.msra.mxu1 %v1247_v28 }
  0x89   : > { %458 = vmatprep.subr.bf16.mxu0 %v1248_v29  ;;  %499 = vmatprep.subr.bf16.mxu1 %v1250_v30 }
  0x8c   : > { %459 = vmatpush1.bf16.msra.mxu0 %v1252_v31  ;;  %500 = vmatpush1.bf16.msra.mxu1 %v1253_v32 }
  0x8d   : > { %1074 = vmatprep.subr.bf16.mxu0 %v1254_v33  ;;  %1096 = vmatprep.subr.bf16.mxu1 %v1255_v34 }
  0x8f   : > { %477 = vmatmul.mubr.bf16.vlgmr.msra.gmra.mrb[0].mxu0 %v251_v35  ;;  %518 = vmatmul.mubr.bf16.vlgmr.msra.gmra.mrb[0].mxu1 %v251_v35 }
  0x90   : > { %1075 = vmatpush3.bf16.msra.mxu0 %v1256_v36  ;;  %1097 = vmatpush3.bf16.msra.mxu1 %v1257_v37 }
  0x91   : > { %1076 = vmatprep.subr.bf16.mxu0 %v1258_v38  ;;  %1098 = vmatprep.subr.bf16.mxu1 %v1259_v39 }
  0x94   : > { %1077 = vmatpush3.bf16.msra.mxu0 %v1260_v40  ;;  %1099 = vmatpush3.bf16.msra.mxu1 %v1261_v41 }
  0x95   : > { %1078 = vmatprep.subr.bf16.mxu0 %v1262_v42  ;;  %1100 = vmatprep.subr.bf16.mxu1 %v1263_v43 }
  0x98   : > { %1079 = vmatpush3.bf16.msra.mxu0 %v1264_v44  ;;  %1101 = vmatpush3.bf16.msra.mxu1 %v1265_v45 }
  0x99   : > { %1080 = vmatprep.subr.bf16.mxu0 %v1266_v46  ;;  %1102 = vmatprep.subr.bf16.mxu1 %v1267_v47 }
  0x9c   : > { %1081 = vmatpush3.bf16.msra.mxu0 %v1268_v48  ;;  %1103 = vmatpush3.bf16.msra.mxu1 %v1269_v49 }
  0x9d   : > { %1082 = vmatprep.subr.bf16.mxu0 %v1270_v50  ;;  %1104 = vmatprep.subr.bf16.mxu1 %v1271_v51 }
  0xa0   : > { %1083 = vmatpush3.bf16.msra.mxu0 %v1272_v52  ;;  %1105 = vmatpush3.bf16.msra.mxu1 %v1273_v53 }
  0xa1   : > { %1084 = vmatprep.subr.bf16.mxu0 %v1274_v54  ;;  %1106 = vmatprep.subr.bf16.mxu1 %v1275_v55 }
  0xa4   : > { %1085 = vmatpush3.bf16.msra.mxu0 %v1276_v56  ;;  %1107 = vmatpush3.bf16.msra.mxu1 %v1277_v57 }
  0xa5   : > { %1086 = vmatprep.subr.bf16.mxu0 %v1278_v58  ;;  %1108 = vmatprep.subr.bf16.mxu1 %v1279_v59 }
  0xa8   : > { %1087 = vmatpush3.bf16.msra.mxu0 %v1280_v60  ;;  %1109 = vmatpush3.bf16.msra.mxu1 %v1281_v61 }
  0xa9   : > { %1088 = vmatprep.subr.bf16.mxu0 %v1282_v62  ;;  %1110 = vmatprep.subr.bf16.mxu1 %v1283_v63 }
  0xac   : > { %1089 = vmatpush3.bf16.msra.mxu0 %v1284_v0  ;;  %1111 = vmatpush3.bf16.msra.mxu1 %v1285_v1 }
 0x162   : > { %v478_v2 = vpop.f32.mrb[0].mxu0  ;;  %v519_v3 = vpop.f32.mrb[0].mxu1 }
 0x163   : > { %v526_v4 = vmax.f32 %v478_v2, 0.0  ;;  %v528_v5 = vmax.f32 %v519_v3, 0.0  ;;  %v480_v6 = vpop.f32.mrb[1].mxu0  ;;  %v521_v7 = vpop.f32.mrb[1].mxu1 }
 0x164   : > { %v527_v8 = vmax.f32 %v480_v6, 0.0  ;;  %v529_v9 = vmax.f32 %v521_v7, 0.0  ;;  %v482_v10 = vpop.f32.mrb[2].mxu0  ;;  %v523_v11 = vpop.f32.mrb[2].mxu1 }
 0x165   : > { %v483_v12 = vpop.f32.mrb[3].mxu0  ;;  %v524_v13 = vpop.f32.mrb[3].mxu1  ;;  %v530_v16 = vpack.c.bf16 %v526_v4, %v526_v4  ;;  %v532_v17 = vpack.c.bf16 %v528_v5, %v528_v5 }
 0x166   : > { %v531_v14 = vpack.c.bf16 %v527_v8, %v527_v8  ;;  %v533_v15 = vpack.c.bf16 %v529_v9, %v529_v9 }
 0x168   : > { %823 = vmatprep.mubr.bf16.mxu0 %v531_v14  ;;  %863 = vmatprep.mubr.bf16.mxu1 %v533_v15 }
 0x169   : > { %824 = vmatmul.mubr.bf16.vlgmr.msra.gmra.mrb[4].mxu0 %v530_v16  ;;  %864 = vmatmul.mubr.bf16.vlgmr.msra.gmra.mrb[4].mxu1 %v532_v17 }
 0x23c   : > { %v1090_v18 = vpop.f32.mrb[4].mxu0  ;;  %v1112_v19 = vpop.f32.mrb[4].mxu1 }
 0x23d   : > { %v1091_v20 = vpop.f32.mrb[5].mxu0  ;;  %v1113_v21 = vpop.f32.mrb[5].mxu1 }
 0x23e   : > { %v1092_v22 = vadd.f32 %v1091_v20, %v1090_v18  ;;  %v1114_v23 = vadd.f32 %v1113_v21, %v1112_v19  ;;  %v1093_v24 = vpop.f32.mrb[6].mxu0  ;;  %v1115_v25 = vpop.f32.mrb[6].mxu1 }
 0x23f   : > { %v1094_v26 = vpop.f32.mrb[7].mxu0  ;;  %v1116_v27 = vpop.f32.mrb[7].mxu1 }
 0x240   : > { %v866_v28 = vadd.f32 %v1114_v23, %v1092_v22 }
 0x242   : > { %877 = vst [vmem:[%s242_s24] sm:$0xff] %v866_v28 }
 0x243   : > { %1385 = shalt.err (!%p1382_p11)
}
 0x244   : > { %s1386_s7 = scalar_lea.hbm %s1694_s10, 128  ;;  %s1390_s18 = scalar_lea.hbm %s1746_s3, 256 }
 0x245   : > { %p1387_p0 = scmp.ne.s32.totalorder %s1694_s10, %s1386_s7  ;;  %p1391_p6 = scmp.lt.u32.totalorder %s1694_s10, %s1746_s3 }
 0x246   : > { %p1392_p7 = scmp.lt.u32.totalorder %s1390_s18, %s1386_s7  ;;  %p1394_p8 = scmp.lt.u32.totalorder %s1386_s7, %s1694_s10 }
 0x247   : > { %p1388_p4 = pnand %p1387_p0, %p1761_p12 }
 0x248   : > { %p1393_p2 = por %p1392_p7, %p1391_p6 }
 0x249   : > { %p1389_p13 = pneg %p1388_p4 }
 0x24a   : > { %p1395_p1 = por %p1394_p8, %p1393_p2 }
 0x24c   : > { %p1396_p10 = pnand %p1395_p1, %p1389_p13 }
 0x24e   : > { %1399 = shalt.err (!%p1396_p10)
}
 0x24f   : > { %1128 = dma.vmem_to_hbm [thread:$0]  (%p1761_p12), %s1696_s8, 128, %s1694_s10, %s879_s15  }
 0x250 PF: > { %s904_s20 = sand.u32 1, %s1438_s12   ;;  %p1762_p3 = scmp.ne.s32.totalorder %s1754_s23, 0 }
 0x251   : > { %p1763_p5 = scmp.ge.s32.totalorder %s1458_s17, 2  ;;  %s905_s22 = scalar_lea.sflag [#allocation5], %s904_s20 }
 0x253   : > { %p1142_p9 = pnand %p1763_p5, %p1762_p3 }
 0x255   : > { %1433 = dma.done.wait (!%p1142_p9), %s905_s22, 128  }
 0x256   : > { %1435 = vsyncadd (!%p1142_p9), %s905_s22, 4294967168  ;;  %s20_s17 = sadd.s32 1, %s1458_s17   ;;  %s1764_s12 = smov %s1442_s13 }
 0x257   : > { %p17_p11 = scmp.ge.s32.totalorder %s20_s17, 4   ;;  %s1765_s13 = smov %s1446_s14 }
 0x258   : > { %s1766_s14 = smov %s1631_s5  ;;  %s1767_s15 = smov %s1454_s16 }
 0x259   : > { %s1768_s16 = smov %s1770_s19  ;;  %19 = sbr.rel (!%p17_p11) target bundleno = 7 (0x7), region = 95 }
 0x260   :  { %910 = vsyncpa [#allocation4], 1 }
 0x261   :  { %912 = vsyncpa [#allocation4 + $0x1], 1 }
 0x262   :  { %913 = vsyncpa [#allocation7], 1 }
 0x263   :  { %914 = vsyncpa [#allocation5], 1 }
 0x264   :  { %916 = vsyncpa [#allocation5 + $0x1], 1 }

</bundles_post_ra>
